<compile_context>
chip_gen: v7x
topology: tpu7x:2x2x1
jax: 0.10.0
libtpu: 0.0.40
codegen_flags: <defaults>
</compile_context>

<pallas_src>
import jax
import jax.numpy as jnp
from jax.experimental import pallas as pl
from jax.experimental.pallas import tpu as pltpu

D_IN = 256
D_HID = 512
LN_EPS = 1e-5


def _round_up(x, m):
    return ((x + m - 1) // m) * m


def seb_kernel(x_ref, g_ref, beta_ref, w1_ref, b1_ref, w2_ref, b2_ref, o_ref):
    # x_ref: (tm, 256) tile of input rows (any float dtype); compute in f32.
    x = x_ref[...].astype(jnp.float32)

    # LayerNorm over the last dim (eps=1e-5, biased variance, matches torch.nn.LayerNorm).
    # E[x^2] - mean^2 -> the two row reductions are independent (co-issue on the XLUs).
    mean = jnp.mean(x, axis=-1, keepdims=True)
    mean_sq = jnp.mean(x * x, axis=-1, keepdims=True)
    var = jnp.maximum(mean_sq - mean * mean, 0.0)
    ln = (x - mean) * jax.lax.rsqrt(var + LN_EPS)
    ln = ln * g_ref[...] + beta_ref[...]                      # (tm, 256), f32

    # MLP: Linear(256->512) -> ReLU -> Linear(512->256); bf16 MXU operands, f32 accumulation.
    h = jnp.dot(ln.astype(jnp.bfloat16), w1_ref[...],
                preferred_element_type=jnp.float32) + b1_ref[...]
    h = jnp.maximum(h, 0.0)                                   # (tm, 512), f32
    y = jnp.dot(h.astype(jnp.bfloat16), w2_ref[...],
                preferred_element_type=jnp.float32) + b2_ref[...]

    # Residual add with the (f32) LayerNorm output; store in the streamed output dtype.
    o_ref[...] = (y + ln).astype(o_ref.dtype)


def _resident_spec(block_shape):
    """Constant-index (VMEM-resident) parameter spec; single-buffered where the API allows it."""
    index_map = lambda i: (0,) * len(block_shape)
    try:
        return pl.BlockSpec(block_shape, index_map, pipeline_mode=pl.Buffered(1))
    except (AttributeError, TypeError):
        # Older Pallas without pipeline_mode / Buffered: fall back to default (double) buffering;
        # costs ~0.5 MiB of VMEM, immaterial at this footprint.
        return pl.BlockSpec(block_shape, index_map)


def prepare_seb_params(gamma, beta, w1, b1, w2, b2):
    """One-time parameter prep: 2-D f32 LN/bias params, bf16 (in, out) weights.

    Weights are stored transposed (in, out) vs torch's (out, in) so the kernel does x @ W.
    Call this once (e.g. at model load), not per forward call.
    """
    return (
        gamma.reshape(1, D_IN).astype(jnp.float32),
        beta.reshape(1, D_IN).astype(jnp.float32),
        w1.astype(jnp.bfloat16),
        b1.reshape(1, D_HID).astype(jnp.float32),
        w2.astype(jnp.bfloat16),
        b2.reshape(1, D_IN).astype(jnp.float32),
    )


def seb_forward(x, params, *, tm=1024, out_dtype=None):
    """x: (B, S, 256); bf16 recommended for I/O bandwidth (any float dtype works).

    params: output of prepare_seb_params(). Output dtype defaults to x.dtype.
    """
    g2, be2, w1_bf, b1_2, w2_bf, b2_2 = params
    B, S, D = x.shape
    assert D == D_IN
    N = B * S
    out_dtype = x.dtype if out_dtype is None else out_dtype

    # Row tile: multiple of 8 (sublane), at most tm, and chosen so the grid has >= 2 blocks
    # whenever N allows it (keeps both v7x TensorCores busy via the "parallel" axis).
    tm_eff = max(8, min(tm, _round_up(pl.cdiv(N, 2), 8)))
    grid_m = pl.cdiv(N, tm_eff)

    x2 = x.reshape(N, D)
    n_rows = N
    if N < tm_eff:
        # Only possible when N < 8: pad a handful of rows (a few KiB) so the single block is a
        # legal (8, 256) tile. No full-tensor copy on real workloads.
        x2 = jnp.pad(x2, ((0, tm_eff - N), (0, 0)))
        n_rows = tm_eff

    out = pl.pallas_call(
        seb_kernel,
        out_shape=jax.ShapeDtypeStruct((n_rows, D_IN), out_dtype),
        grid_spec=pltpu.PrefetchScalarGridSpec(
            num_scalar_prefetch=0,
            grid=(grid_m,),
            in_specs=[
                pl.BlockSpec((tm_eff, D_IN), lambda i: (i, 0)),   # x tile (streamed)
                _resident_spec((1, D_IN)),                        # LN gamma (resident)
                _resident_spec((1, D_IN)),                        # LN beta  (resident)
                _resident_spec((D_IN, D_HID)),                    # W1 bf16  (resident)
                _resident_spec((1, D_HID)),                       # b1       (resident)
                _resident_spec((D_HID, D_IN)),                    # W2 bf16  (resident)
                _resident_spec((1, D_IN)),                        # b2       (resident)
            ],
            out_specs=pl.BlockSpec((tm_eff, D_IN), lambda i: (i, 0)),
        ),
        compiler_params=pltpu.CompilerParams(
            # Row-tile axis is fully independent -> sharded across TensorCores on v7x.
            dimension_semantics=("parallel",),
        ),
    )(x2, g2, be2, w1_bf, b1_2, w2_bf, b2_2)

    return out[:N].reshape(B, S, D_IN)


def seb_reference(x, gamma, beta, w1, b1, w2, b2):
    """Pure f32 reference matching the PyTorch module."""
    xf = x.astype(jnp.float32)
    mean = jnp.mean(xf, axis=-1, keepdims=True)
    var = jnp.mean((xf - mean) ** 2, axis=-1, keepdims=True)
    ln = (xf - mean) * jax.lax.rsqrt(var + LN_EPS) * gamma + beta
    h = jnp.maximum(ln @ w1 + b1, 0.0)
    return h @ w2 + b2 + ln


if __name__ == "__main__":
    key = jax.random.PRNGKey(0)
    k_x, k_w1, k_b1, k_w2, k_b2 = jax.random.split(key, 5)

    B, S = 2, 8  # x: (batch=2, seq=8, hidden=256)
    x_f32 = jax.random.normal(k_x, (B, S, D_IN), dtype=jnp.float32)
    x = x_f32.astype(jnp.bfloat16)   # stream activations in bf16 (halves HBM I/O)

    # LayerNorm params (torch default init: gamma=1, beta=0)
    gamma = jnp.ones((D_IN,), dtype=jnp.float32)
    beta = jnp.zeros((D_IN,), dtype=jnp.float32)

    # Linear params, stored as (in, out), i.e. transposed vs torch's (out, in).
    lim1 = 1.0 / (D_IN ** 0.5)
    lim2 = 1.0 / (D_HID ** 0.5)
    w1 = jax.random.uniform(k_w1, (D_IN, D_HID), minval=-lim1, maxval=lim1, dtype=jnp.float32)
    b1 = jax.random.uniform(k_b1, (D_HID,), minval=-lim1, maxval=lim1, dtype=jnp.float32)
    w2 = jax.random.uniform(k_w2, (D_HID, D_IN), minval=-lim2, maxval=lim2, dtype=jnp.float32)
    b2 = jax.random.uniform(k_b2, (D_IN,), minval=-lim2, maxval=lim2, dtype=jnp.float32)

    params = prepare_seb_params(gamma, beta, w1, b1, w2, b2)   # one-time prep (bf16 weights)
    fwd = jax.jit(seb_forward)

    out = jax.block_until_ready(fwd(x, params))

    ref = seb_reference(x.astype(jnp.float32), gamma, beta, w1, b1, w2, b2)
    assert out.shape == (B, S, D_IN)
    assert out.dtype == x.dtype
    # Tolerance reflects bf16 activation streaming + bf16 MXU operands (f32 accumulation);
    # observed max abs error is ~1e-2..3e-2 vs the pure-f32 reference.
    err = jnp.max(jnp.abs(out.astype(jnp.float32) - ref))
    assert jnp.allclose(out.astype(jnp.float32), ref, atol=5e-2, rtol=5e-2), f"mismatch: {err}"

    print("KERNEL_OK")
</pallas_src>

<mosaic_0001>
module attributes {stable_mosaic.version = 11 : i64} {
  func.func @seb_kernel(%arg0: i32, %arg1: memref<8x256xbf16, #tpu.memory_space<vmem>>, %arg2: memref<1x256xf32, #tpu.memory_space<vmem>>, %arg3: memref<1x256xf32, #tpu.memory_space<vmem>>, %arg4: memref<256x512xbf16, #tpu.memory_space<vmem>>, %arg5: memref<1x512xf32, #tpu.memory_space<vmem>>, %arg6: memref<512x256xbf16, #tpu.memory_space<vmem>>, %arg7: memref<1x256xf32, #tpu.memory_space<vmem>>, %arg8: memref<8x256xbf16, #tpu.memory_space<vmem>>) attributes {dimension_semantics = [#tpu.dimension_semantics<parallel>], iteration_bounds = array<i64: 2>, scalar_prefetch = 0 : i64, scratch_operands = 0 : i64, tpu.core_type = #tpu.core_type<tc>, window_params = [{transform_indices = @transform_0, window_bounds = array<i64: 8, 256>}, {pipeline_mode = #tpu.pipeline_mode<synchronous>, transform_indices = @transform_1, window_bounds = array<i64: 1, 256>}, {pipeline_mode = #tpu.pipeline_mode<synchronous>, transform_indices = @transform_2, window_bounds = array<i64: 1, 256>}, {pipeline_mode = #tpu.pipeline_mode<synchronous>, transform_indices = @transform_3, window_bounds = array<i64: 256, 512>}, {pipeline_mode = #tpu.pipeline_mode<synchronous>, transform_indices = @transform_4, window_bounds = array<i64: 1, 512>}, {pipeline_mode = #tpu.pipeline_mode<synchronous>, transform_indices = @transform_5, window_bounds = array<i64: 512, 256>}, {pipeline_mode = #tpu.pipeline_mode<synchronous>, transform_indices = @transform_6, window_bounds = array<i64: 1, 256>}, {transform_indices = @transform_7, window_bounds = array<i64: 8, 256>}]} {
    %c0 = arith.constant 0 : index
    %c0_0 = arith.constant 0 : index
    %0 = vector.load %arg1[%c0, %c0_0] : memref<8x256xbf16, #tpu.memory_space<vmem>>, vector<8x256xbf16>
    %1 = arith.extf %0 : vector<8x256xbf16> to vector<8x256xf32>
    %cst = arith.constant dense<0.000000e+00> : vector<8xf32>
    %2 = vector.multi_reduction <add>, %1, %cst [1] : vector<8x256xf32> to vector<8xf32>
    %3 = vector.shape_cast %2 : vector<8xf32> to vector<8x1xf32>
    %cst_1 = arith.constant 2.560000e+02 : f32
    %4 = vector.broadcast %cst_1 : f32 to vector<8x1xf32>
    %5 = arith.divf %3, %4 : vector<8x1xf32>
    %6 = arith.mulf %1, %1 : vector<8x256xf32>
    %cst_2 = arith.constant dense<0.000000e+00> : vector<8xf32>
    %7 = vector.multi_reduction <add>, %6, %cst_2 [1] : vector<8x256xf32> to vector<8xf32>
    %8 = vector.shape_cast %7 : vector<8xf32> to vector<8x1xf32>
    %cst_3 = arith.constant 2.560000e+02 : f32
    %9 = vector.broadcast %cst_3 : f32 to vector<8x1xf32>
    %10 = arith.divf %8, %9 : vector<8x1xf32>
    %11 = arith.mulf %5, %5 : vector<8x1xf32>
    %12 = arith.subf %10, %11 : vector<8x1xf32>
    %cst_4 = arith.constant 0.000000e+00 : f32
    %13 = vector.broadcast %cst_4 : f32 to vector<8x1xf32>
    %14 = arith.maximumf %12, %13 : vector<8x1xf32>
    %15 = vector.broadcast %5 : vector<8x1xf32> to vector<8x256xf32>
    %16 = arith.subf %1, %15 : vector<8x256xf32>
    %cst_5 = arith.constant 9.99999974E-6 : f32
    %17 = vector.broadcast %cst_5 : f32 to vector<8x1xf32>
    %18 = arith.addf %14, %17 : vector<8x1xf32>
    %19 = math.rsqrt %18 : vector<8x1xf32>
    %20 = vector.broadcast %19 : vector<8x1xf32> to vector<8x256xf32>
    %21 = arith.mulf %16, %20 : vector<8x256xf32>
    %c0_6 = arith.constant 0 : index
    %c0_7 = arith.constant 0 : index
    %22 = vector.load %arg2[%c0_6, %c0_7] : memref<1x256xf32, #tpu.memory_space<vmem>>, vector<1x256xf32>
    %23 = vector.broadcast %22 : vector<1x256xf32> to vector<8x256xf32>
    %24 = arith.mulf %21, %23 : vector<8x256xf32>
    %c0_8 = arith.constant 0 : index
    %c0_9 = arith.constant 0 : index
    %25 = vector.load %arg3[%c0_8, %c0_9] : memref<1x256xf32, #tpu.memory_space<vmem>>, vector<1x256xf32>
    %26 = vector.broadcast %25 : vector<1x256xf32> to vector<8x256xf32>
    %27 = arith.addf %24, %26 : vector<8x256xf32>
    %28 = arith.truncf %27 : vector<8x256xf32> to vector<8x256xbf16>
    %c0_10 = arith.constant 0 : index
    %c0_11 = arith.constant 0 : index
    %29 = vector.load %arg4[%c0_10, %c0_11] : memref<256x512xbf16, #tpu.memory_space<vmem>>, vector<256x512xbf16>
    %cst_12 = arith.constant dense<0.000000e+00> : vector<8x512xf32>
    %30 = tpu.matmul %28, %29, %cst_12 {dimension_numbers = #tpu.dot_dimension_numbers<[1], [0], [0], [1], [0, 0, 1, 1], [], []>} : vector<8x256xbf16>, vector<256x512xbf16>, vector<8x512xf32> -> vector<8x512xf32>
    %c0_13 = arith.constant 0 : index
    %c0_14 = arith.constant 0 : index
    %31 = vector.load %arg5[%c0_13, %c0_14] : memref<1x512xf32, #tpu.memory_space<vmem>>, vector<1x512xf32>
    %32 = vector.broadcast %31 : vector<1x512xf32> to vector<8x512xf32>
    %33 = arith.addf %30, %32 : vector<8x512xf32>
    %cst_15 = arith.constant 0.000000e+00 : f32
    %34 = vector.broadcast %cst_15 : f32 to vector<8x512xf32>
    %35 = arith.maximumf %33, %34 : vector<8x512xf32>
    %36 = arith.truncf %35 : vector<8x512xf32> to vector<8x512xbf16>
    %c0_16 = arith.constant 0 : index
    %c0_17 = arith.constant 0 : index
    %37 = vector.load %arg6[%c0_16, %c0_17] : memref<512x256xbf16, #tpu.memory_space<vmem>>, vector<512x256xbf16>
    %cst_18 = arith.constant dense<0.000000e+00> : vector<8x256xf32>
    %38 = tpu.matmul %36, %37, %cst_18 {dimension_numbers = #tpu.dot_dimension_numbers<[1], [0], [0], [1], [0, 0, 1, 1], [], []>} : vector<8x512xbf16>, vector<512x256xbf16>, vector<8x256xf32> -> vector<8x256xf32>
    %c0_19 = arith.constant 0 : index
    %c0_20 = arith.constant 0 : index
    %39 = vector.load %arg7[%c0_19, %c0_20] : memref<1x256xf32, #tpu.memory_space<vmem>>, vector<1x256xf32>
    %40 = vector.broadcast %39 : vector<1x256xf32> to vector<8x256xf32>
    %41 = arith.addf %38, %40 : vector<8x256xf32>
    %42 = arith.addf %41, %27 : vector<8x256xf32>
    %43 = arith.truncf %42 : vector<8x256xf32> to vector<8x256xbf16>
    %c0_21 = arith.constant 0 : index
    %c0_22 = arith.constant 0 : index
    %44 = vector.load %arg8[%c0_21, %c0_22] : memref<8x256xbf16, #tpu.memory_space<vmem>>, vector<8x256xbf16>
    tpu.vector_store %arg8[%c0_21, %c0_22], %43 {strides = array<i32>} : memref<8x256xbf16, #tpu.memory_space<vmem>>, vector<8x256xbf16>,
    return
  }
  func.func @transform_0(%arg0: i32) -> (i32, i32) {
    %c0_i32 = arith.constant 0 : i32
    %c0_i32_0 = arith.constant 0 : i32
    return %arg0, %c0_i32 : i32, i32
  }
  func.func @transform_1(%arg0: i32) -> (i32, i32) {
    %c0_i32 = arith.constant 0 : i32
    %c0_i32_0 = arith.constant 0 : i32
    %c0_i32_1 = arith.constant 0 : i32
    return %c0_i32, %c0_i32_0 : i32, i32
  }
  func.func @transform_2(%arg0: i32) -> (i32, i32) {
    %c0_i32 = arith.constant 0 : i32
    %c0_i32_0 = arith.constant 0 : i32
    %c0_i32_1 = arith.constant 0 : i32
    return %c0_i32, %c0_i32_0 : i32, i32
  }
  func.func @transform_3(%arg0: i32) -> (i32, i32) {
    %c0_i32 = arith.constant 0 : i32
    %c0_i32_0 = arith.constant 0 : i32
    %c0_i32_1 = arith.constant 0 : i32
    return %c0_i32, %c0_i32_0 : i32, i32
  }
  func.func @transform_4(%arg0: i32) -> (i32, i32) {
    %c0_i32 = arith.constant 0 : i32
    %c0_i32_0 = arith.constant 0 : i32
    %c0_i32_1 = arith.constant 0 : i32
    return %c0_i32, %c0_i32_0 : i32, i32
  }
  func.func @transform_5(%arg0: i32) -> (i32, i32) {
    %c0_i32 = arith.constant 0 : i32
    %c0_i32_0 = arith.constant 0 : i32
    %c0_i32_1 = arith.constant 0 : i32
    return %c0_i32, %c0_i32_0 : i32, i32
  }
  func.func @transform_6(%arg0: i32) -> (i32, i32) {
    %c0_i32 = arith.constant 0 : i32
    %c0_i32_0 = arith.constant 0 : i32
    %c0_i32_1 = arith.constant 0 : i32
    return %c0_i32, %c0_i32_0 : i32, i32
  }
  func.func @transform_7(%arg0: i32) -> (i32, i32) {
    %c0_i32 = arith.constant 0 : i32
    %c0_i32_0 = arith.constant 0 : i32
    return %arg0, %c0_i32 : i32, i32
  }
}

</mosaic_0001>

<bundles_post_ra>
// kernel: seb_forward.1
= control target key start
LH: loop header
LB: loop body
LE: loop exit
PB: predicated region body
PF: predicated region fallthrough
CT: control target
= control target key end

     0   :  { %12 = vsyncpa [#allocation3], 0  ;;  %s2372_s0 = inlined_call_operand.hbm [shape: bf16[16,256], index: 0, kind: input, shape index: {}]   ;;  %s2373_s1 = inlined_call_operand.vmem [shape: f32[1,256], index: 1, kind: input, shape index: {}]   ;;  %s2374_s2 = inlined_call_operand.vmem [shape: f32[1,256], index: 2, kind: input, shape index: {}]   ;;  %s2375_s3 = inlined_call_operand.hbm [shape: bf16[256,512], index: 3, kind: input, shape index: {}]   ;;  %s2376_s4 = inlined_call_operand.vmem [shape: f32[1,512], index: 4, kind: input, shape index: {}]   ;;  %s2377_s5 = inlined_call_operand.hbm [shape: bf16[512,256], index: 5, kind: input, shape index: {}]   ;;  %s2378_s6 = inlined_call_operand.vmem [shape: f32[1,256], index: 6, kind: input, shape index: {}]   ;;  %s2379_s7 = inlined_call_operand.hbm [shape: bf16[16,256], index: 7, kind: output, shape index: {}]  }
   0x1   :  { %14 = vsyncpa [#allocation3 + $0x1], 0 }
   0x2   :  { %15 = vsyncpa [#allocation6], 0 }
   0x3   :  { %16 = vsyncpa [#allocation4], 0 }
   0x4   :  { %18 = vsyncpa [#allocation4 + $0x1], 0  ;;  %s2087_s24 = smov 0   ;;  %s2089_s25 = smov 0  }
   0x5   :  { %s2091_s26 = smov 0   ;;  %s2093_s27 = smov 0  }
   0x6 LB: > { %s2108_s28 = sadd.s32 4294967295, %s2037_s27   ;;  %s1466_s29 = sadd.s32 4294967294, %s2037_s27   ;;  %s2037_s27 = sphi %s2093_s27, %s2399_s27   ;;  %s2033_s26 = sphi %s2091_s26, %s2398_s26   ;;  %s2029_s25 = sphi %s2089_s25, %s2397_s25   ;;  %s2025_s24 = sphi %s2087_s24, %s2396_s24  }
   0x7   : > { %p44_p0 = scmp.ne.s32.totalorder %s2029_s25, %s2025_s24  ;;  %p2380_p1 = scmp.eq.s32.totalorder %s2108_s28, 0 }
   0x8   : > { %p200_p3 = scmp.eq.s32.totalorder %s1466_s29, 1  ;;  %p1467_p5 = scmp.ge.s32.totalorder %s2037_s27, 1 }
   0x9   : > { %p2117_p4 = por %p2380_p1, %p44_p0  ;;  %p207_p7 = scmp.lt.s32.totalorder %s2037_s27, 3 }
   0xa   : > { %p2122_p6 = por %p200_p3, %p44_p0  ;;  %s2039_s10 = smov [#allocation5]  }
   0xb   : > { %s2383_s30 = scalar_select %p2117_p4, 1, 0 }
   0xc   : > { %s2384_s8 = scalar_select %p2122_p6, 1, 0 }
   0xd   : > { %p2127_p8 = pnand %p1467_p5, %p207_p7  ;;  %s225_s11 = sshll.u32 %s2039_s10, 4  ;;  %s2131_s11 = int_to_ptr.vmem [resolvable:$true] %s225_s11 }
   0xe   : > { %s2040_s13 = smov [#allocation7]   ;;  %s1881_s17 = scalar_lea.hbm %s2375_s3, 8192 }
   0xf   : > { %p1628_p9 = pneg %p2127_p8  ;;  %s241_s14 = sshll.u32 %s2040_s13, 4  ;;  %s2142_s14 = int_to_ptr.vmem [resolvable:$true] %s241_s14 }
  0x10   : > { %p1882_p12 = scmp.ne.s32.totalorder %s2375_s3, %s1881_s17  ;;  %p1888_p5 = scmp.lt.u32.totalorder %s1881_s17, %s2375_s3 }
  0x11   : > { %p2138_p11 = pnand %p1628_p9, %p2380_p1 }
  0x13   : > { %p1883_p13 = pneg %p2138_p11 }
  0x15   : > { %p1884_p0 = pnand %p1883_p13, %p1882_p12 }
  0x17   : > { %p1885_p3 = pneg %p1884_p0 }
  0x19   : > { %p1890_p7 = pnand %p1888_p5, %p1885_p3 }
  0x1b   : > { %1893 = shalt.err (!%p1890_p7)
}
  0x1c   : > { %s1894_s22 = scalar_lea.vmem %s2131_s11, 8192  ;;  %p1902_p2 = scmp.lt.s32.totalorder %s2131_s11, %s2131_s11 }
  0x1d   : > { %p1895_p9 = scmp.ne.s32.totalorder %s2131_s11, %s1894_s22  ;;  %p1903_p12 = scmp.lt.s32.totalorder %s1894_s22, %s1894_s22 }
  0x1f   : > { %p1897_p10 = pnand %p1895_p9, %p1883_p13  ;;  %p1904_p0 = por %p1903_p12, %p1902_p2 }
  0x21   : > { %p1898_p1 = pneg %p1897_p10 }
  0x23   : > { %p1905_p6 = pnand %p1904_p0, %p1898_p1 }
  0x25   : > { %1908 = shalt.err (!%p1905_p6)
}
  0x26   : > { %s2041_s23 = smov 256   ;;  %s2042_s29 = smov 16  }
  0x27   : > { %1631 = dma.hbm_to_vmem [thread:$0]  (!%p2138_p11), %s2375_s3, 8192, %s2131_s11, [#allocation6], %s2041_s23, %s2041_s23, %s2042_s29  }
  0x28   : > { %s1909_s17 = scalar_lea.hbm %s2377_s5, 8192 }
  0x29   : > { %p1910_p2 = scmp.ne.s32.totalorder %s2377_s5, %s1909_s17  ;;  %p1916_p10 = scmp.lt.u32.totalorder %s1909_s17, %s2377_s5 }
  0x2b   : > { %p1912_p1 = pnand %p1910_p2, %p1883_p13 }
  0x2d   : > { %p1913_p6 = pneg %p1912_p1 }
  0x2f   : > { %p1918_p3 = pnand %p1916_p10, %p1913_p6 }
  0x31   : > { %1921 = shalt.err (!%p1918_p3)
}
  0x32   : > { %s1922_s11 = scalar_lea.vmem %s2142_s14, 8192  ;;  %p1930_p12 = scmp.lt.s32.totalorder %s2142_s14, %s2142_s14 }
  0x33   : > { %p1923_p5 = scmp.ne.s32.totalorder %s2142_s14, %s1922_s11  ;;  %p1931_p0 = scmp.lt.s32.totalorder %s1922_s11, %s1922_s11 }
  0x35   : > { %p1925_p7 = pnand %p1923_p5, %p1883_p13  ;;  %p1932_p2 = por %p1931_p0, %p1930_p12 }
  0x37   : > { %p1926_p9 = pneg %p1925_p7 }
  0x39   : > { %p1933_p1 = pnand %p1932_p2, %p1926_p9 }
  0x3b   : > { %1936 = shalt.err (!%p1933_p1)
}
  0x3c   : > { %s2043_s22 = smov 128   ;;  %s2044_s23 = smov 8  }
  0x3d   : > { %1634 = dma.hbm_to_vmem [thread:$0]  (!%p2138_p11), %s2377_s5, 8192, %s2142_s14, [#allocation6], %s2043_s22, %s2043_s22, %s2044_s23  }
  0x3e   : > { %s2197_s13 = sadd.s32 1, %s2037_s27   ;;  %s31_s16 = sadd.s32 1, %s2033_s26 }
  0x3f   : > { %s28_s15 = ssub.s32 %s2037_s27, %s2197_s13  ;;  %p38_p6 = scmp.ne.s32.totalorder %s2033_s26, %s2029_s25 }
  0x40   : > { %p29_p13 = scmp.eq.s32.totalorder %s28_s15, 0  ;;  %p39_p10 = scmp.eq.s32.totalorder %s2037_s27, 0 }
  0x41   : > { %p2387_p5 = scmp.eq.s32.totalorder %s2108_s28, 1  ;;  %p1645_p9 = scmp.lt.s32.totalorder %s2037_s27, 2 }
  0x42   : > { %s2206_s17 = scalar_select %p29_p13, %s2033_s26, %s31_s16  }
  0x43   : > { %p40_p3 = por %p39_p10, %p38_p6  ;;  %p2210_p7 = por %p2387_p5, %p38_p6 }
  0x44   : > { %s258_s12 = sand.u32 1, %s2033_s26   ;;  %s1613_s14 = sshll.u32 %s2037_s27, 7 }
  0x45   : > { %s2388_s18 = scalar_select %p2210_p7, 1, 0 }
  0x46   : > { %s1471_s19 = sshll.u32 %s258_s12, 3  ;;  %s2220_s11 = scalar_lea.hbm %s2372_s0, %s1613_s14 }
  0x47   : > { %s262_s22 = scalar_lea.vmem [#allocation2], %s1471_s19  ;;  %p2224_p11 = pnand %p1645_p9, %p40_p3 }
  0x48   : > { %s270_s23 = sshll.u32 %s262_s22, 4  ;;  %s259_s10 = scalar_lea.sflag [#allocation3], %s258_s12  ;;  %s2222_s23 = int_to_ptr.vmem [resolvable:$true] %s270_s23 }
  0x49   : > { %s1937_s15 = scalar_lea.hbm %s2220_s11, 128  ;;  %p1939_p0 = pneg %p2224_p11 }
  0x4a   : > { %p1938_p12 = scmp.ne.s32.totalorder %s2220_s11, %s1937_s15  ;;  %s1942_s14 = scalar_lea.hbm %s2372_s0, 256 }
  0x4b   : > { %p1943_p13 = scmp.lt.u32.totalorder %s2220_s11, %s2372_s0  ;;  %p1944_p6 = scmp.lt.u32.totalorder %s1942_s14, %s1937_s15 }
  0x4c   : > { %p1940_p2 = pnand %p1939_p0, %p1938_p12  ;;  %p1946_p3 = scmp.lt.u32.totalorder %s1937_s15, %s2220_s11 }
  0x4d   : > { %p1945_p10 = por %p1944_p6, %p1943_p13 }
  0x4e   : > { %p1941_p1 = pneg %p1940_p2 }
  0x4f   : > { %p1947_p5 = por %p1946_p3, %p1945_p10 }
  0x51   : > { %p1948_p9 = pnand %p1947_p5, %p1941_p1 }
  0x53   : > { %1951 = shalt.err (!%p1948_p9)
}
  0x54   : > { %s1952_s12 = scalar_lea.vmem %s2222_s23, 128  ;;  %s2045_s22 = smov [#allocation2]  }
  0x55   : > { %p1953_p12 = scmp.ne.s32.totalorder %s2222_s23, %s1952_s12  ;;  %s1957_s16 = sshll.u32 %s2045_s22, 4  ;;  %s1958_s16 = int_to_ptr.vmem [resolvable:$false] %s1957_s16 }
  0x56   : > { %s1959_s19 = scalar_lea.vmem %s1958_s16, 256  ;;  %p1960_p4 = scmp.lt.s32.totalorder %s2222_s23, %s1958_s16 }
  0x57   : > { %p1955_p2 = pnand %p1953_p12, %p1939_p0  ;;  %p1961_p13 = scmp.lt.s32.totalorder %s1959_s19, %s1952_s12 }
  0x59   : > { %p1956_p7 = pneg %p1955_p2  ;;  %p1962_p6 = por %p1961_p13, %p1960_p4 }
  0x5b   : > { %p1963_p10 = pnand %p1962_p6, %p1956_p7 }
  0x5d   : > { %1966 = shalt.err (!%p1963_p10)
}
  0x5e   : > { %1638 = dma.hbm_to_vmem [thread:$0]  (!%p2224_p11), %s2220_s11, 128, %s2222_s23, %s259_s10  }
  0x5f   : > { %279 = sbr.rel (%p2127_p8) target bundleno = 740 (0x2e4), region = 48  ;;  %s2256_s15 = sand.u32 (!%p2127_p8), 1, %s2029_s25  }
  0x60   : > { %s1475_s14 = sshll.u32 (!%p2127_p8), %s2256_s15, 3  ;;  %s282_s20 = scalar_lea.sflag (!%p2127_p8), [#allocation3], %s2256_s15 }
  0x61   : > { %s285_s21 = scalar_lea.vmem (!%p2127_p8), [#allocation2], %s1475_s14  ;;  %p2390_p4 = scmp.ne.s32.totalorder (!%p2127_p8), %s2383_s30, 0 }
  0x66   : > { %2012 = dma.done.wait (%p2390_p4), %s282_s20, 128  }
  0x67   : > { %2014 = vsyncadd (%p2390_p4), %s282_s20, 4294967168  ;;  %p2391_p7 = scmp.eq.s32.totalorder %s2108_s28, 0 }
  0x69   : > { %2016 = dma.done.wait (%p2391_p7), [#allocation6], 16384   ;;  %p2392_p8 = pmov %p2391_p7 }
  0x6a   : > { %v324_v0 = vld [vmem:[%s285_s21] sm:$0xff]  ;;  %s1615_s16 = sshll.u32 %s2108_s28, 7  ;;  %s323_s19 = scalar_lea.vmem [#allocation8], %s1475_s14 }
  0x6b   : > { %2018 = vsyncadd (%p2392_p8), [#allocation6], 4294950912  ;;  %v2270_v1 = vunpack.c.l.bf16 %v324_v0  ;;  %v2272_v2 = vunpack.c.h.bf16 %v324_v0  ;;  %v1687_v3 = vld [vmem:[#allocation5 + $0x4] ss:$16 sps:$4 sm:$0xff]   ;;  %v1689_v4 = vld [vmem:[#allocation5 + $0xc] ss:$16 sps:$4 sm:$0xff]   ;;  %s2328_s9 = scalar_lea.hbm %s2379_s7, %s1615_s16 }
  0x6c   : > { %v1691_v5 = vld [vmem:[#allocation5] ss:$16 sps:$4 sm:$0xff]   ;;  %v1692_v6 = vld [vmem:[#allocation5 + $0x8] ss:$16 sps:$4 sm:$0xff]   ;;  %783 = vmatprep.subr.bf16.mxu0 %v1687_v3  ;;  %v1693_v10 = vld [vmem:[#allocation5 + $0x24] ss:$16 sps:$4 sm:$0xff]   ;;  %824 = vmatprep.subr.bf16.mxu1 %v1689_v4 }
  0x6d   : > { %v327_v7 = vadd.f32 %v2272_v2, %v2270_v1  ;;  %v332_v8 = vmul.f32 %v2270_v1, %v2270_v1  ;;  %v333_v9 = vmul.f32 %v2272_v2, %v2272_v2  ;;  %784 = vmatpush1.bf16.msra.mxu0 %v1691_v5  ;;  %v1695_v11 = vld [vmem:[#allocation5 + $0x2c] ss:$16 sps:$4 sm:$0xff]   ;;  %825 = vmatpush1.bf16.msra.mxu1 %v1692_v6  ;;  %v1697_v13 = vld [vmem:[#allocation5 + $0x20] ss:$16 sps:$4 sm:$0xff]   ;;  %v1698_v14 = vld [vmem:[#allocation5 + $0x28] ss:$16 sps:$4 sm:$0xff]  }
  0x6e   : > { %785 = vmatprep.subr.bf16.mxu0 %v1693_v10  ;;  %826 = vmatprep.subr.bf16.mxu1 %v1695_v11  ;;  %v1699_v15 = vld [vmem:[#allocation5 + $0x44] ss:$16 sps:$4 sm:$0xff]   ;;  %v1701_v16 = vld [vmem:[#allocation5 + $0x4c] ss:$16 sps:$4 sm:$0xff]   ;;  %v1703_v17 = vld [vmem:[#allocation5 + $0x40] ss:$16 sps:$4 sm:$0xff]  }
  0x6f   : > { %328 = vadd.xlane.f32.xlu0 %v327_v7  ;;  %v334_v12 = vadd.f32 %v333_v9, %v332_v8  ;;  %v1704_v18 = vld [vmem:[#allocation5 + $0x48] ss:$16 sps:$4 sm:$0xff]   ;;  %v1705_v19 = vld [vmem:[#allocation5 + $0x64] ss:$16 sps:$4 sm:$0xff]   ;;  %v1707_v20 = vld [vmem:[#allocation5 + $0x6c] ss:$16 sps:$4 sm:$0xff]  }
  0x70   : > { %v1709_v21 = vld [vmem:[#allocation5 + $0x60] ss:$16 sps:$4 sm:$0xff]   ;;  %v1710_v22 = vld [vmem:[#allocation5 + $0x68] ss:$16 sps:$4 sm:$0xff]   ;;  %v1711_v23 = vld [vmem:[#allocation5 + $0x84] ss:$16 sps:$4 sm:$0xff]  }
  0x71   : > { %786 = vmatpush1.bf16.msra.mxu0 %v1697_v13  ;;  %827 = vmatpush1.bf16.msra.mxu1 %v1698_v14  ;;  %v1713_v24 = vld [vmem:[#allocation5 + $0x8c] ss:$16 sps:$4 sm:$0xff]   ;;  %v1715_v25 = vld [vmem:[#allocation5 + $0x80] ss:$16 sps:$4 sm:$0xff]   ;;  %v1716_v26 = vld [vmem:[#allocation5 + $0x88] ss:$16 sps:$4 sm:$0xff]  }
  0x72   : > { %787 = vmatprep.subr.bf16.mxu0 %v1699_v15  ;;  %828 = vmatprep.subr.bf16.mxu1 %v1701_v16  ;;  %v1717_v27 = vld [vmem:[#allocation5 + $0xa4] ss:$16 sps:$4 sm:$0xff]   ;;  %v1719_v28 = vld [vmem:[#allocation5 + $0xac] ss:$16 sps:$4 sm:$0xff]   ;;  %v1721_v29 = vld [vmem:[#allocation5 + $0xa0] ss:$16 sps:$4 sm:$0xff]  }
  0x73   : > { %335 = vadd.xlane.f32.xlu0 %v334_v12  ;;  %v1722_v30 = vld [vmem:[#allocation5 + $0xa8] ss:$16 sps:$4 sm:$0xff]   ;;  %v1723_v31 = vld [vmem:[#allocation5 + $0xc4] ss:$16 sps:$4 sm:$0xff]   ;;  %v1725_v32 = vld [vmem:[#allocation5 + $0xcc] ss:$16 sps:$4 sm:$0xff]  }
  0x74   : > { %v1727_v33 = vld [vmem:[#allocation5 + $0xc0] ss:$16 sps:$4 sm:$0xff]   ;;  %v1728_v34 = vld [vmem:[#allocation5 + $0xc8] ss:$16 sps:$4 sm:$0xff]   ;;  %v1729_v35 = vld [vmem:[#allocation5 + $0xe4] ss:$16 sps:$4 sm:$0xff]  }
  0x75   : > { %788 = vmatpush1.bf16.msra.mxu0 %v1703_v17  ;;  %829 = vmatpush1.bf16.msra.mxu1 %v1704_v18  ;;  %v1731_v36 = vld [vmem:[#allocation5 + $0xec] ss:$16 sps:$4 sm:$0xff]   ;;  %v1733_v37 = vld [vmem:[#allocation5 + $0xe0] ss:$16 sps:$4 sm:$0xff]   ;;  %v1734_v38 = vld [vmem:[#allocation5 + $0xe8] ss:$16 sps:$4 sm:$0xff]   ;;  %v349_v18 = vlaneseq }
  0x76   : > { %789 = vmatprep.subr.bf16.mxu0 %v1705_v19  ;;  %830 = vmatprep.subr.bf16.mxu1 %v1707_v20  ;;  %v1735_v39 = vld [vmem:[#allocation5 + $0x104] ss:$16 sps:$4 sm:$0xff]   ;;  %v1737_v40 = vld [vmem:[#allocation5 + $0x10c] ss:$16 sps:$4 sm:$0xff]   ;;  %v1739_v41 = vld [vmem:[#allocation5 + $0x100] ss:$16 sps:$4 sm:$0xff]  }
  0x77   : > { %v1740_v42 = vld [vmem:[#allocation5 + $0x108] ss:$16 sps:$4 sm:$0xff]   ;;  %v1741_v43 = vld [vmem:[#allocation5 + $0x124] ss:$16 sps:$4 sm:$0xff]   ;;  %v1743_v44 = vld [vmem:[#allocation5 + $0x12c] ss:$16 sps:$4 sm:$0xff]  }
  0x78   : > { %v1745_v45 = vld [vmem:[#allocation5 + $0x120] ss:$16 sps:$4 sm:$0xff]   ;;  %v1746_v46 = vld [vmem:[#allocation5 + $0x128] ss:$16 sps:$4 sm:$0xff]   ;;  %v1747_v47 = vld [vmem:[#allocation5 + $0x144] ss:$16 sps:$4 sm:$0xff]  }
  0x79   : > { %790 = vmatpush1.bf16.msra.mxu0 %v1709_v21  ;;  %831 = vmatpush1.bf16.msra.mxu1 %v1710_v22  ;;  %v1749_v48 = vld [vmem:[#allocation5 + $0x14c] ss:$16 sps:$4 sm:$0xff]   ;;  %v1751_v49 = vld [vmem:[#allocation5 + $0x140] ss:$16 sps:$4 sm:$0xff]   ;;  %v1752_v50 = vld [vmem:[#allocation5 + $0x148] ss:$16 sps:$4 sm:$0xff]  }
  0x7a   : > { %791 = vmatprep.subr.bf16.mxu0 %v1711_v23  ;;  %832 = vmatprep.subr.bf16.mxu1 %v1713_v24  ;;  %v1753_v51 = vld [vmem:[#allocation5 + $0x164] ss:$16 sps:$4 sm:$0xff]   ;;  %v1755_v52 = vld [vmem:[#allocation5 + $0x16c] ss:$16 sps:$4 sm:$0xff]   ;;  %v1757_v53 = vld [vmem:[#allocation5 + $0x160] ss:$16 sps:$4 sm:$0xff]  }
  0x7b   : > { %v1758_v54 = vld [vmem:[#allocation5 + $0x168] ss:$16 sps:$4 sm:$0xff]   ;;  %v1759_v55 = vld [vmem:[#allocation5 + $0x184] ss:$16 sps:$4 sm:$0xff]   ;;  %v1761_v56 = vld [vmem:[#allocation5 + $0x18c] ss:$16 sps:$4 sm:$0xff]  }
  0x7c   : > { %v1763_v57 = vld [vmem:[#allocation5 + $0x180] ss:$16 sps:$4 sm:$0xff]   ;;  %v1764_v58 = vld [vmem:[#allocation5 + $0x188] ss:$16 sps:$4 sm:$0xff]   ;;  %v1765_v59 = vld [vmem:[#allocation5 + $0x1a4] ss:$16 sps:$4 sm:$0xff]  }
  0x7d   : > { %792 = vmatpush1.bf16.msra.mxu0 %v1715_v25  ;;  %833 = vmatpush1.bf16.msra.mxu1 %v1716_v26  ;;  %v1767_v60 = vld [vmem:[#allocation5 + $0x1ac] ss:$16 sps:$4 sm:$0xff]   ;;  %v1769_v61 = vld [vmem:[#allocation5 + $0x1a0] ss:$16 sps:$4 sm:$0xff]   ;;  %v1770_v62 = vld [vmem:[#allocation5 + $0x1a8] ss:$16 sps:$4 sm:$0xff]  }
  0x7e   : > { %793 = vmatprep.subr.bf16.mxu0 %v1717_v27  ;;  %834 = vmatprep.subr.bf16.mxu1 %v1719_v28  ;;  %v1771_v63 = vld [vmem:[#allocation5 + $0x1c4] ss:$16 sps:$4 sm:$0xff]   ;;  %v1773_v0 = vld [vmem:[#allocation5 + $0x1cc] ss:$16 sps:$4 sm:$0xff]   ;;  %v1775_v3 = vld [vmem:[#allocation5 + $0x1c0] ss:$16 sps:$4 sm:$0xff]  }
  0x7f   : > { %v1776_v4 = vld [vmem:[#allocation5 + $0x1c8] ss:$16 sps:$4 sm:$0xff]   ;;  %v1777_v5 = vld [vmem:[#allocation5 + $0x1e4] ss:$16 sps:$4 sm:$0xff]   ;;  %v1779_v6 = vld [vmem:[#allocation5 + $0x1ec] ss:$16 sps:$4 sm:$0xff]  }
  0x80   : > { %v1781_v7 = vld [vmem:[#allocation5 + $0x1e0] ss:$16 sps:$4 sm:$0xff]   ;;  %v1782_v8 = vld [vmem:[#allocation5 + $0x1e8] ss:$16 sps:$4 sm:$0xff]   ;;  %v1785_v9 = vld [vmem:[#allocation7 + $0x4] ss:$8 sps:$4 sm:$0xff]  }
  0x81   : > { %794 = vmatpush1.bf16.msra.mxu0 %v1721_v29  ;;  %835 = vmatpush1.bf16.msra.mxu1 %v1722_v30  ;;  %v1788_v10 = vld [vmem:[#allocation7 + $0x104] ss:$8 sps:$4 sm:$0xff]   ;;  %v2280_v20 = vshrl.u32 %v349_v18, 7  ;;  %v347_v23 = vld [vmem:[%s2373_s1] sm:$0x3]  ;;  %s1377_s20 = sshll.u32 %s323_s19, 4  ;;  %s2330_s20 = int_to_ptr.vmem [resolvable:$true] %s1377_s20 }
  0x82   : > { %795 = vmatprep.subr.bf16.mxu0 %v1723_v31  ;;  %836 = vmatprep.subr.bf16.mxu1 %v1725_v32  ;;  %v361_v24 = vld [vmem:[%s2374_s2] sm:$0x3]  ;;  %v1851_v18 = vld [vmem:[#allocation7 + $0xb4] ss:$8 sps:$4 sm:$0xff]   ;;  %s1363_s11 = scalar_lea.sflag [#allocation4], %s2256_s15  ;;  %s1967_s23 = scalar_lea.vmem %s2330_s20, 128 }
  0x83   : > { %v2283_v21 = vsub.s32 0, %v2280_v20  ;;  %v2286_v22 = vsub.s32 1, %v2280_v20  ;;  %p1968_p11 = scmp.ne.s32.totalorder %s2330_s20, %s1967_s23  ;;  %p2393_p0 = scmp.ne.s32.totalorder %s2388_s18, 0 }
  0x84   : > { %s2046_s28 = smov [#allocation8]  }
  0x85   : > { %796 = vmatpush1.bf16.msra.mxu0 %v1727_v33  ;;  %837 = vmatpush1.bf16.msra.mxu1 %v1728_v34  ;;  %v352_v27 = vrot.slane %v347_v23, %v2283_v21  ;;  %v356_v28 = vrot.slane %v347_v23, %v2286_v22  ;;  %v366_v31 = vrot.slane %v361_v24, %v2283_v21  ;;  %v1849_v23 = vld [vmem:[#allocation7 + $0xb0] ss:$8 sps:$4 sm:$0xff]   ;;  %p1969_p1 = pnand %p1968_p11, %p2393_p0  ;;  %s1971_s14 = sshll.u32 %s2046_s28, 4  ;;  %s1972_s14 = int_to_ptr.vmem [resolvable:$false] %s1971_s14 }
  0x86   : > { %797 = vmatprep.subr.bf16.mxu0 %v1729_v35  ;;  %838 = vmatprep.subr.bf16.mxu1 %v1731_v36  ;;  %v370_v32 = vrot.slane %v361_v24, %v2286_v22  ;;  %v1852_v24 = vld [vmem:[#allocation7 + $0x1b0] ss:$8 sps:$4 sm:$0xff]   ;;  %s1973_s29 = scalar_lea.vmem %s1972_s14, 256  ;;  %p1974_p5 = scmp.lt.s32.totalorder %s2330_s20, %s1972_s14 }
  0x87   : > { %p1970_p3 = pneg %p1969_p1  ;;  %p1975_p9 = scmp.lt.s32.totalorder %s1973_s29, %s1967_s23 }
  0x89   : > { %798 = vmatpush1.bf16.msra.mxu0 %v1733_v37  ;;  %839 = vmatpush1.bf16.msra.mxu1 %v1734_v38  ;;  %v1783_v38 = vld [vmem:[#allocation7] ss:$8 sps:$4 sm:$0xff]   ;;  %p1976_p12 = por %p1975_p9, %p1974_p5 }
  0x8a   : > { %799 = vmatprep.subr.bf16.mxu0 %v1735_v39  ;;  %840 = vmatprep.subr.bf16.mxu1 %v1737_v40  ;;  %v1786_v39 = vld [vmem:[#allocation7 + $0x100] ss:$8 sps:$4 sm:$0xff]   ;;  %v1791_v40 = vld [vmem:[#allocation7 + $0x14] ss:$8 sps:$4 sm:$0xff]  }
  0x8b   : > { %p1977_p2 = pnand %p1976_p12, %p1970_p3 }
  0x8d   : > { %800 = vmatpush1.bf16.msra.mxu0 %v1739_v41  ;;  %841 = vmatpush1.bf16.msra.mxu1 %v1740_v42  ;;  %v1794_v41 = vld [vmem:[#allocation7 + $0x114] ss:$8 sps:$4 sm:$0xff]   ;;  %v1789_v42 = vld [vmem:[#allocation7 + $0x10] ss:$8 sps:$4 sm:$0xff]  }
  0x8e   : > { %801 = vmatprep.subr.bf16.mxu0 %v1741_v43  ;;  %842 = vmatprep.subr.bf16.mxu1 %v1743_v44  ;;  %v1792_v43 = vld [vmem:[#allocation7 + $0x110] ss:$8 sps:$4 sm:$0xff]   ;;  %v1797_v44 = vld [vmem:[#allocation7 + $0x24] ss:$8 sps:$4 sm:$0xff]  }
  0x91   : > { %802 = vmatpush1.bf16.msra.mxu0 %v1745_v45  ;;  %843 = vmatpush1.bf16.msra.mxu1 %v1746_v46  ;;  %v1800_v45 = vld [vmem:[#allocation7 + $0x124] ss:$8 sps:$4 sm:$0xff]   ;;  %v1795_v46 = vld [vmem:[#allocation7 + $0x20] ss:$8 sps:$4 sm:$0xff]  }
  0x92   : > { %803 = vmatprep.subr.bf16.mxu0 %v1747_v47  ;;  %844 = vmatprep.subr.bf16.mxu1 %v1749_v48  ;;  %v1798_v47 = vld [vmem:[#allocation7 + $0x120] ss:$8 sps:$4 sm:$0xff]   ;;  %v1803_v48 = vld [vmem:[#allocation7 + $0x34] ss:$8 sps:$4 sm:$0xff]  }
  0x95   : > { %804 = vmatpush1.bf16.msra.mxu0 %v1751_v49  ;;  %845 = vmatpush1.bf16.msra.mxu1 %v1752_v50  ;;  %v1806_v49 = vld [vmem:[#allocation7 + $0x134] ss:$8 sps:$4 sm:$0xff]   ;;  %v1801_v50 = vld [vmem:[#allocation7 + $0x30] ss:$8 sps:$4 sm:$0xff]  }
  0x96   : > { %805 = vmatprep.subr.bf16.mxu0 %v1753_v51  ;;  %846 = vmatprep.subr.bf16.mxu1 %v1755_v52  ;;  %v1804_v51 = vld [vmem:[#allocation7 + $0x130] ss:$8 sps:$4 sm:$0xff]   ;;  %v1809_v52 = vld [vmem:[#allocation7 + $0x44] ss:$8 sps:$4 sm:$0xff]  }
  0x99   : > { %806 = vmatpush1.bf16.msra.mxu0 %v1757_v53  ;;  %847 = vmatpush1.bf16.msra.mxu1 %v1758_v54  ;;  %v1812_v53 = vld [vmem:[#allocation7 + $0x144] ss:$8 sps:$4 sm:$0xff]   ;;  %v1807_v54 = vld [vmem:[#allocation7 + $0x40] ss:$8 sps:$4 sm:$0xff]  }
  0x9a   : > { %807 = vmatprep.subr.bf16.mxu0 %v1759_v55  ;;  %848 = vmatprep.subr.bf16.mxu1 %v1761_v56  ;;  %v1810_v55 = vld [vmem:[#allocation7 + $0x140] ss:$8 sps:$4 sm:$0xff]   ;;  %v1815_v56 = vld [vmem:[#allocation7 + $0x54] ss:$8 sps:$4 sm:$0xff]  }
  0x9d   : > { %808 = vmatpush1.bf16.msra.mxu0 %v1763_v57  ;;  %849 = vmatpush1.bf16.msra.mxu1 %v1764_v58  ;;  %v1818_v57 = vld [vmem:[#allocation7 + $0x154] ss:$8 sps:$4 sm:$0xff]   ;;  %v1813_v58 = vld [vmem:[#allocation7 + $0x50] ss:$8 sps:$4 sm:$0xff]  }
  0x9e   : > { %809 = vmatprep.subr.bf16.mxu0 %v1765_v59  ;;  %850 = vmatprep.subr.bf16.mxu1 %v1767_v60  ;;  %v1816_v59 = vld [vmem:[#allocation7 + $0x150] ss:$8 sps:$4 sm:$0xff]   ;;  %v1821_v60 = vld [vmem:[#allocation7 + $0x64] ss:$8 sps:$4 sm:$0xff]  }
  0xa1   : > { %810 = vmatpush1.bf16.msra.mxu0 %v1769_v61  ;;  %851 = vmatpush1.bf16.msra.mxu1 %v1770_v62  ;;  %v1824_v61 = vld [vmem:[#allocation7 + $0x164] ss:$8 sps:$4 sm:$0xff]   ;;  %v1819_v62 = vld [vmem:[#allocation7 + $0x60] ss:$8 sps:$4 sm:$0xff]  }
  0xa2   : > { %811 = vmatprep.subr.bf16.mxu0 %v1771_v63  ;;  %852 = vmatprep.subr.bf16.mxu1 %v1773_v0  ;;  %v1822_v63 = vld [vmem:[#allocation7 + $0x160] ss:$8 sps:$4 sm:$0xff]   ;;  %v1827_v0 = vld [vmem:[#allocation7 + $0x74] ss:$8 sps:$4 sm:$0xff]  }
  0xa5   : > { %812 = vmatpush1.bf16.msra.mxu0 %v1775_v3  ;;  %853 = vmatpush1.bf16.msra.mxu1 %v1776_v4  ;;  %v1830_v3 = vld [vmem:[#allocation7 + $0x174] ss:$8 sps:$4 sm:$0xff]   ;;  %v1825_v4 = vld [vmem:[#allocation7 + $0x70] ss:$8 sps:$4 sm:$0xff]  }
  0xa6   : > { %813 = vmatprep.subr.bf16.mxu0 %v1777_v5  ;;  %854 = vmatprep.subr.bf16.mxu1 %v1779_v6  ;;  %v1828_v5 = vld [vmem:[#allocation7 + $0x170] ss:$8 sps:$4 sm:$0xff]   ;;  %v1833_v6 = vld [vmem:[#allocation7 + $0x84] ss:$8 sps:$4 sm:$0xff]  }
  0xa9   : > { %814 = vmatpush1.bf16.msra.mxu0 %v1781_v7  ;;  %855 = vmatpush1.bf16.msra.mxu1 %v1782_v8  ;;  %v1836_v7 = vld [vmem:[#allocation7 + $0x184] ss:$8 sps:$4 sm:$0xff]   ;;  %v1831_v8 = vld [vmem:[#allocation7 + $0x80] ss:$8 sps:$4 sm:$0xff]  }
  0xaa   : > { %1269 = vmatprep.subr.bf16.mxu0 %v1785_v9  ;;  %1310 = vmatprep.subr.bf16.mxu1 %v1788_v10  ;;  %v1834_v9 = vld [vmem:[#allocation7 + $0x180] ss:$8 sps:$4 sm:$0xff]   ;;  %v1839_v10 = vld [vmem:[#allocation7 + $0x94] ss:$8 sps:$4 sm:$0xff]  }
  0xfc   : > { %v329_v11 = vpop.xlane.xlu0 %328 }
  0xfd   : > { %v331_v12 = vmul.f32 0.00390625, %v329_v11  ;;  %v1842_v11 = vld [vmem:[#allocation7 + $0x194] ss:$8 sps:$4 sm:$0xff]  }
  0xff   : > { %v338_v14 = vmul.f32 %v331_v12, %v331_v12  ;;  %v341_v25 = vsub.f32 %v2270_v1, %v331_v12  ;;  %v342_v26 = vsub.f32 %v2272_v2, %v331_v12  ;;  %v1837_v12 = vld [vmem:[#allocation7 + $0x90] ss:$8 sps:$4 sm:$0xff]  }
 0x100   : > { %v336_v13 = vpop.xlane.xlu0 %335 }
 0x101   : > { %v337_v15 = vmul.f32 0.00390625, %v336_v13  ;;  %v1840_v13 = vld [vmem:[#allocation7 + $0x190] ss:$8 sps:$4 sm:$0xff]  }
 0x103   : > { %v339_v16 = vsub.f32 %v337_v15, %v338_v14  ;;  %v1845_v14 = vld [vmem:[#allocation7 + $0xa4] ss:$8 sps:$4 sm:$0xff]  }
 0x104   : > { %v1848_v15 = vld [vmem:[#allocation7 + $0x1a4] ss:$8 sps:$4 sm:$0xff]  }
 0x105   : > { %v340_v17 = vmax.f32 %v339_v16, 0.0  ;;  %v1843_v16 = vld [vmem:[#allocation7 + $0xa0] ss:$8 sps:$4 sm:$0xff]  }
 0x107   : > { %v343_v19 = vadd.f32 1e-05, %v340_v17  ;;  %v1846_v17 = vld [vmem:[#allocation7 + $0x1a0] ss:$8 sps:$4 sm:$0xff]  }
 0x109   : > { %1879 = vrsqrt.f32 %v343_v19  ;;  %v1854_v19 = vld [vmem:[#allocation7 + $0x1b4] ss:$8 sps:$4 sm:$0xff]  }
 0x113   : > { %v1880_v29 = vpop.eup %1879 }
 0x114   : > { %v346_v30 = vmul.f32 %v1880_v29, %v342_v26  ;;  %v345_v33 = vmul.f32 %v1880_v29, %v341_v25  ;;  %v1857_v25 = vld [vmem:[#allocation7 + $0xc4] ss:$8 sps:$4 sm:$0xff]   ;;  %v1863_v29 = vld [vmem:[#allocation7 + $0xd4] ss:$8 sps:$4 sm:$0xff]  }
 0x115   : > { %v1860_v26 = vld [vmem:[#allocation7 + $0x1c4] ss:$8 sps:$4 sm:$0xff]  }
 0x116   : > { %v360_v34 = vmul.f32 %v356_v28, %v346_v30  ;;  %v359_v35 = vmul.f32 %v352_v27, %v345_v33  ;;  %v1855_v27 = vld [vmem:[#allocation7 + $0xc0] ss:$8 sps:$4 sm:$0xff]   ;;  %v1866_v30 = vld [vmem:[#allocation7 + $0x1d4] ss:$8 sps:$4 sm:$0xff]   ;;  %v1869_v33 = vld [vmem:[#allocation7 + $0xe4] ss:$8 sps:$4 sm:$0xff]  }
 0x117   : > { %v1858_v28 = vld [vmem:[#allocation7 + $0x1c0] ss:$8 sps:$4 sm:$0xff]  }
 0x118   : > { %v2300_v36 = vadd.f32 %v370_v32, %v360_v34  ;;  %v2302_v37 = vadd.f32 %v366_v31, %v359_v35  ;;  %v1861_v31 = vld [vmem:[#allocation7 + $0xd0] ss:$8 sps:$4 sm:$0xff]   ;;  %v1872_v34 = vld [vmem:[#allocation7 + $0x1e4] ss:$8 sps:$4 sm:$0xff]   ;;  %v1867_v35 = vld [vmem:[#allocation7 + $0xe0] ss:$8 sps:$4 sm:$0xff]  }
 0x119   : > { %v1864_v32 = vld [vmem:[#allocation7 + $0x1d0] ss:$8 sps:$4 sm:$0xff]  }
 0x11a   : > { %v376_v1 = vpack.c.bf16 %v2300_v36, %v2300_v36  ;;  %v375_v2 = vpack.c.bf16 %v2302_v37, %v2302_v37 }
 0x11c   : > { %815 = vmatprep.mubr.bf16.mxu0 %v376_v1  ;;  %856 = vmatprep.mubr.bf16.mxu1 %v376_v1  ;;  %v1870_v1 = vld [vmem:[#allocation7 + $0x1e0] ss:$8 sps:$4 sm:$0xff]  }
 0x11d   : > { %816 = vmatmul.mubr.bf16.vlgmr.msra.gmra.mrb[0].mxu0 %v375_v2  ;;  %857 = vmatmul.mubr.bf16.vlgmr.msra.gmra.mrb[0].mxu1 %v375_v2  ;;  %v1875_v2 = vld [vmem:[#allocation7 + $0xf4] ss:$8 sps:$4 sm:$0xff]  }
 0x11e   : > { %1270 = vmatpush1.bf16.msra.mxu0 %v1783_v38  ;;  %1311 = vmatpush1.bf16.msra.mxu1 %v1786_v39  ;;  %v1878_v38 = vld [vmem:[#allocation7 + $0x1f4] ss:$8 sps:$4 sm:$0xff]   ;;  %v1873_v39 = vld [vmem:[#allocation7 + $0xf0] ss:$8 sps:$4 sm:$0xff]  }
 0x11f   : > { %1271 = vmatprep.subr.bf16.mxu0 %v1791_v40  ;;  %1312 = vmatprep.subr.bf16.mxu1 %v1794_v41  ;;  %v1876_v40 = vld [vmem:[#allocation7 + $0x1f0] ss:$8 sps:$4 sm:$0xff]   ;;  %v453_v41 = vsub.s32 2, %v2280_v20 }
 0x122   : > { %1272 = vmatpush1.bf16.msra.mxu0 %v1789_v42  ;;  %1313 = vmatpush1.bf16.msra.mxu1 %v1792_v43  ;;  %v441_v42 = vld [vmem:[%s2376_s4] sm:$0xf]  ;;  %v457_v43 = vsub.s32 3, %v2280_v20 }
 0x123   : > { %1273 = vmatprep.subr.bf16.mxu0 %v1797_v44  ;;  %1314 = vmatprep.subr.bf16.mxu1 %v1800_v45  ;;  %v446_v44 = vrot.slane %v441_v42, %v2283_v21  ;;  %v454_v45 = vrot.slane %v441_v42, %v453_v41 }
 0x126   : > { %1274 = vmatpush1.bf16.msra.mxu0 %v1795_v46  ;;  %1315 = vmatpush1.bf16.msra.mxu1 %v1798_v47  ;;  %v450_v46 = vrot.slane %v441_v42, %v2286_v22  ;;  %v458_v47 = vrot.slane %v441_v42, %v457_v43 }
 0x127   : > { %1275 = vmatprep.subr.bf16.mxu0 %v1803_v48  ;;  %1316 = vmatprep.subr.bf16.mxu1 %v1806_v49 }
 0x12a   : > { %1276 = vmatpush1.bf16.msra.mxu0 %v1801_v50  ;;  %1317 = vmatpush1.bf16.msra.mxu1 %v1804_v51 }
 0x12b   : > { %1277 = vmatprep.subr.bf16.mxu0 %v1809_v52  ;;  %1318 = vmatprep.subr.bf16.mxu1 %v1812_v53 }
 0x12e   : > { %1278 = vmatpush1.bf16.msra.mxu0 %v1807_v54  ;;  %1319 = vmatpush1.bf16.msra.mxu1 %v1810_v55 }
 0x12f   : > { %1279 = vmatprep.subr.bf16.mxu0 %v1815_v56  ;;  %1320 = vmatprep.subr.bf16.mxu1 %v1818_v57 }
 0x132   : > { %1280 = vmatpush1.bf16.msra.mxu0 %v1813_v58  ;;  %1321 = vmatpush1.bf16.msra.mxu1 %v1816_v59 }
 0x133   : > { %1281 = vmatprep.subr.bf16.mxu0 %v1821_v60  ;;  %1322 = vmatprep.subr.bf16.mxu1 %v1824_v61 }
 0x136   : > { %1282 = vmatpush1.bf16.msra.mxu0 %v1819_v62  ;;  %1323 = vmatpush1.bf16.msra.mxu1 %v1822_v63 }
 0x137   : > { %1283 = vmatprep.subr.bf16.mxu0 %v1827_v0  ;;  %1324 = vmatprep.subr.bf16.mxu1 %v1830_v3 }
 0x13a   : > { %1284 = vmatpush1.bf16.msra.mxu0 %v1825_v4  ;;  %1325 = vmatpush1.bf16.msra.mxu1 %v1828_v5  ;;  %v937_v5 = vld [vmem:[%s2378_s6] sm:$0x3] }
 0x13b   : > { %1285 = vmatprep.subr.bf16.mxu0 %v1833_v6  ;;  %1326 = vmatprep.subr.bf16.mxu1 %v1836_v7  ;;  %v942_v6 = vrot.slane %v937_v5, %v2283_v21  ;;  %v946_v7 = vrot.slane %v937_v5, %v2286_v22 }
 0x13e   : > { %1286 = vmatpush1.bf16.msra.mxu0 %v1831_v8  ;;  %1327 = vmatpush1.bf16.msra.mxu1 %v1834_v9 }
 0x13f   : > { %1287 = vmatprep.subr.bf16.mxu0 %v1839_v10  ;;  %1328 = vmatprep.subr.bf16.mxu1 %v1842_v11 }
 0x142   : > { %1288 = vmatpush1.bf16.msra.mxu0 %v1837_v12  ;;  %1329 = vmatpush1.bf16.msra.mxu1 %v1840_v13 }
 0x143   : > { %1289 = vmatprep.subr.bf16.mxu0 %v1845_v14  ;;  %1330 = vmatprep.subr.bf16.mxu1 %v1848_v15 }
 0x146   : > { %1290 = vmatpush1.bf16.msra.mxu0 %v1843_v16  ;;  %1331 = vmatpush1.bf16.msra.mxu1 %v1846_v17 }
 0x147   : > { %1291 = vmatprep.subr.bf16.mxu0 %v1851_v18  ;;  %1332 = vmatprep.subr.bf16.mxu1 %v1854_v19 }
 0x14a   : > { %1292 = vmatpush1.bf16.msra.mxu0 %v1849_v23  ;;  %1333 = vmatpush1.bf16.msra.mxu1 %v1852_v24 }
 0x14b   : > { %1293 = vmatprep.subr.bf16.mxu0 %v1857_v25  ;;  %1334 = vmatprep.subr.bf16.mxu1 %v1860_v26 }
 0x14e   : > { %1294 = vmatpush1.bf16.msra.mxu0 %v1855_v27  ;;  %1335 = vmatpush1.bf16.msra.mxu1 %v1858_v28 }
 0x14f   : > { %1295 = vmatprep.subr.bf16.mxu0 %v1863_v29  ;;  %1336 = vmatprep.subr.bf16.mxu1 %v1866_v30 }
 0x152   : > { %1296 = vmatpush1.bf16.msra.mxu0 %v1861_v31  ;;  %1337 = vmatpush1.bf16.msra.mxu1 %v1864_v32 }
 0x153   : > { %1297 = vmatprep.subr.bf16.mxu0 %v1869_v33  ;;  %1338 = vmatprep.subr.bf16.mxu1 %v1872_v34 }
 0x156   : > { %1298 = vmatpush1.bf16.msra.mxu0 %v1867_v35  ;;  %1339 = vmatpush1.bf16.msra.mxu1 %v1870_v1 }
 0x157   : > { %1299 = vmatprep.subr.bf16.mxu0 %v1875_v2  ;;  %1340 = vmatprep.subr.bf16.mxu1 %v1878_v38 }
 0x15a   : > { %1300 = vmatpush1.bf16.msra.mxu0 %v1873_v39  ;;  %1341 = vmatpush1.bf16.msra.mxu1 %v1876_v40 }
 0x1f0   : > { %v817_v48 = vpop.f32.mrb[0].mxu0  ;;  %v858_v49 = vpop.f32.mrb[0].mxu1 }
 0x1f1   : > { %v818_v50 = vadd.f32 %v817_v48, %v446_v44  ;;  %v859_v51 = vadd.f32 %v858_v49, %v454_v45  ;;  %v819_v52 = vpop.f32.mrb[1].mxu0  ;;  %v860_v53 = vpop.f32.mrb[1].mxu1 }
 0x1f2   : > { %v820_v54 = vadd.f32 %v819_v52, %v450_v46  ;;  %v861_v55 = vadd.f32 %v860_v53, %v458_v47  ;;  %v821_v56 = vpop.f32.mrb[2].mxu0  ;;  %v862_v57 = vpop.f32.mrb[2].mxu1 }
 0x1f3   : > { %v865_v58 = vmax.f32 %v818_v50, 0.0  ;;  %v867_v59 = vmax.f32 %v859_v51, 0.0  ;;  %v822_v60 = vpop.f32.mrb[3].mxu0  ;;  %v863_v20 = vpop.f32.mrb[3].mxu1 }
 0x1f4   : > { %v866_v61 = vmax.f32 %v820_v54, 0.0  ;;  %v868_v62 = vmax.f32 %v861_v55, 0.0 }
 0x1f5   : > { %v869_v3 = vpack.c.bf16 %v865_v58, %v865_v58  ;;  %v871_v4 = vpack.c.bf16 %v867_v59, %v867_v59 }
 0x1f6   : > { %v870_v63 = vpack.c.bf16 %v866_v61, %v866_v61  ;;  %v872_v0 = vpack.c.bf16 %v868_v62, %v868_v62 }
 0x1f8   : > { %1301 = vmatprep.mubr.bf16.mxu0 %v870_v63  ;;  %1342 = vmatprep.mubr.bf16.mxu1 %v872_v0 }
 0x1f9   : > { %1302 = vmatmul.mubr.bf16.vlgmr.msra.gmra.mrb[4].mxu0 %v869_v3  ;;  %1343 = vmatmul.mubr.bf16.vlgmr.msra.gmra.mrb[4].mxu1 %v871_v4 }
 0x2cc   : > { %v1303_v8 = vpop.f32.mrb[4].mxu0  ;;  %v1344_v9 = vpop.f32.mrb[4].mxu1 }
 0x2cd   : > { %v1304_v10 = vadd.f32 %v1303_v8, %v942_v6  ;;  %v1305_v11 = vpop.f32.mrb[5].mxu0  ;;  %v1346_v12 = vpop.f32.mrb[5].mxu1 }
 0x2ce   : > { %v1306_v13 = vadd.f32 %v1305_v11, %v946_v7  ;;  %v1307_v14 = vpop.f32.mrb[6].mxu0  ;;  %v1348_v15 = vpop.f32.mrb[6].mxu1 }
 0x2cf   : > { %v1345_v16 = vadd.f32 %v1344_v9, %v1304_v10  ;;  %v1308_v17 = vpop.f32.mrb[7].mxu0  ;;  %v1349_v18 = vpop.f32.mrb[7].mxu1 }
 0x2d0   : > { %v1347_v19 = vadd.f32 %v1346_v12, %v1306_v13 }
 0x2d1   : > { %v1351_v23 = vadd.f32 %v1345_v16, %v2302_v37 }
 0x2d2   : > { %v1352_v21 = vadd.f32 %v1347_v19, %v2300_v36 }
 0x2d4   : > { %v1614_v22 = vpack.c.bf16 %v1352_v21, %v1351_v23 }
 0x2d6   : > { %1361 = vst [vmem:[%s323_s19] sm:$0xff] %v1614_v22 }
 0x2d7   : > { %1980 = shalt.err (!%p1977_p2)
}
 0x2d8   : > { %s1981_s15 = scalar_lea.hbm %s2328_s9, 128  ;;  %s1985_s22 = scalar_lea.hbm %s2379_s7, 256 }
 0x2d9   : > { %p1982_p13 = scmp.ne.s32.totalorder %s2328_s9, %s1981_s15  ;;  %p1986_p4 = scmp.lt.u32.totalorder %s2328_s9, %s2379_s7 }
 0x2da   : > { %p1987_p7 = scmp.lt.u32.totalorder %s1985_s22, %s1981_s15  ;;  %p1989_p11 = scmp.lt.u32.totalorder %s1981_s15, %s2328_s9 }
 0x2db   : > { %p1983_p6 = pnand %p1982_p13, %p2393_p0 }
 0x2dc   : > { %p1988_p8 = por %p1987_p7, %p1986_p4 }
 0x2dd   : > { %p1984_p10 = pneg %p1983_p6 }
 0x2de   : > { %p1990_p1 = por %p1989_p11, %p1988_p8 }
 0x2e0   : > { %p1991_p3 = pnand %p1990_p1, %p1984_p10 }
 0x2e2   : > { %1994 = shalt.err (!%p1991_p3)
}
 0x2e3   : > { %1626 = dma.vmem_to_hbm [thread:$0]  (%p2393_p0), %s2330_s20, 128, %s2328_s9, %s1363_s11  }
 0x2e4 PF: > { %s1389_s21 = sand.u32 1, %s2025_s24   ;;  %p2394_p5 = scmp.ne.s32.totalorder %s2384_s8, 0 }
 0x2e5   : > { %p2395_p9 = scmp.ge.s32.totalorder %s2037_s27, 2  ;;  %s1390_s30 = scalar_lea.sflag [#allocation4], %s1389_s21 }
 0x2e7   : > { %p1640_p12 = pnand %p2395_p9, %p2394_p5 }
 0x2e9   : > { %2020 = dma.done.wait (!%p1640_p12), %s1390_s30, 128  }
 0x2ea   : > { %2022 = vsyncadd (!%p1640_p12), %s1390_s30, 4294967168  ;;  %p21_p2 = scmp.ge.s32.totalorder %s2197_s13, 4   ;;  %s2396_s24 = smov %s2029_s25 }
 0x2eb   : > { %s2397_s25 = smov %s2033_s26  ;;  %s2398_s26 = smov %s2206_s17 }
 0x2ec   : > { %s2399_s27 = smov %s2197_s13  ;;  %23 = sbr.rel (!%p21_p2) target bundleno = 6 (0x6), region = 101 }
 0x2f3   :  { %1395 = vsyncpa [#allocation3], 1 }
 0x2f4   :  { %1397 = vsyncpa [#allocation3 + $0x1], 1 }
 0x2f5   :  { %1398 = vsyncpa [#allocation6], 1 }
 0x2f6   :  { %1399 = vsyncpa [#allocation4], 1 }
 0x2f7   :  { %1401 = vsyncpa [#allocation4 + $0x1], 1 }

</bundles_post_ra>
